<compile_context>
chip_gen: v5e
topology: v5e:2x2
jax: 0.10.0
libtpu: 0.0.40
codegen_flags: <defaults>
</compile_context>

<pallas_src>
import functools

import jax
import jax.numpy as jnp
from jax.experimental import pallas as pl
from jax.experimental.pallas import tpu as pltpu

LANE = 128
# Pad the node axis to a multiple of 256 so the dst-row axis always has an
# even number (>= 2) of 128-row tiles -> both v7x TensorCores get work even at
# the minimum tile size.
NODE_PAD = 256


def _round_up(x, m):
    return (x + m - 1) // m * m


def _pick_row_tile(n_pad):
    """Largest dst-row tile that divides n_pad while keeping >= 2 row tiles
    (so the 'parallel' row axis actually shards across both v7x cores)."""
    for tm in (512, 256, 128):
        if n_pad % tm == 0 and n_pad // tm >= 2:
            return tm
    return min(n_pad, 128)


def _pick_k_tile(k_total):
    """Largest K tile over the concatenated adjacency: long contiguous HBM
    bursts + fewer grid steps.  VMEM cost stays tiny (a 512x1024 bf16 A tile
    is 1 MiB per buffer), well under the scoped-VMEM default everywhere."""
    for tk in (1024, 512, 256, 128):
        if k_total % tk == 0:
            return tk
    return k_total


# ---------------------------------------------------------------------------
# Kernel 1: per-slot feature transform
#   slot r < R : Y[r] = X @ Wn[r]                (neighbour path, no bias)
#   slot r = R : S    = X @ (sum_r Ws[r]) + b    (folded self path + bias)
# Output in bf16 for the next kernel's MXU operands.
# ---------------------------------------------------------------------------
def _feature_transform_kernel(x_ref, w_ref, b_ref, y_ref):
    y_ref[...] = (
        jnp.dot(x_ref[...], w_ref[...], preferred_element_type=jnp.float32)
        + b_ref[...]
    ).astype(y_ref.dtype)


def _feature_transform(x, w_stack, b_stack, *, tm):
    n_pad, f_in = x.shape
    n_slots, _, f_out = w_stack.shape
    assert n_pad % tm == 0, (n_pad, tm)
    return pl.pallas_call(
        _feature_transform_kernel,
        out_shape=jax.ShapeDtypeStruct((n_slots, n_pad, f_out), jnp.bfloat16),
        grid=(n_slots, n_pad // tm),
        in_specs=[
            pl.BlockSpec((tm, f_in), lambda r, i: (i, 0)),               # X rows
            pl.BlockSpec((None, f_in, f_out), lambda r, i: (r, 0, 0)),   # W[r]
            pl.BlockSpec((None, 1, f_out), lambda r, i: (r, 0, 0)),      # b[r]
        ],
        out_specs=pl.BlockSpec((None, tm, f_out), lambda r, i: (r, i, 0)),
        compiler_params=pltpu.CompilerParams(
            dimension_semantics=("parallel", "parallel")),
    )(x, w_stack, b_stack)


# ---------------------------------------------------------------------------
# Kernel 2: tiled  out = relu?( A_cat @ Y_cat + S )
#   grid = (row tiles, K tiles); f32 accumulator in VMEM scratch, initialized
#   from the S row tile (the folded self path computed by kernel 1).
# ---------------------------------------------------------------------------
def _sage_aggregate_kernel(s_ref, a_ref, y_ref, o_ref, acc_ref, *, apply_relu):
    k = pl.program_id(1)

    @pl.when(k == 0)
    def _init():
        acc_ref[...] = s_ref[...].astype(jnp.float32)

    # Neighbour path: one long-K MXU matmul over [A0 | A1] @ [Y0 ; Y1].
    acc_ref[...] += jnp.dot(
        a_ref[...], y_ref[...], preferred_element_type=jnp.float32)

    @pl.when(k == pl.num_programs(1) - 1)
    def _finalize():
        out = acc_ref[...]
        if apply_relu:                     # fused inter-layer ReLU (f32 VPU)
            out = jnp.maximum(out, 0.0)
        o_ref[...] = out.astype(o_ref.dtype)


def _sage_aggregate(a_cat, y_all_flat, *, num_rel, n_pad, apply_relu,
                    out_dtype, tm, tk):
    k_total = a_cat.shape[1]
    f_out = y_all_flat.shape[1]
    assert n_pad % tm == 0, (n_pad, tm)
    assert k_total % tk == 0, (k_total, tk)
    rows_per_tile = n_pad // tm
    k_steps = k_total // tk

    a_kwargs = {}
    if k_steps >= 3:
        # Triple-buffer the dominant A_cat stream to hide DMA arrival jitter
        # (only meaningful when there are several K steps per row tile).
        a_kwargs["pipeline_mode"] = pl.Buffered(3)
    a_spec = pl.BlockSpec((tm, tk), lambda i, k: (i, k), **a_kwargs)

    # y_all_flat holds [Y0 ; Y1 ; ... ; S]; the same array is passed twice
    # with different index maps (S row tile for init, Y_cat K tiles for the
    # accumulation) -- no wrapper-side slicing / extra HBM copies.
    return pl.pallas_call(
        functools.partial(_sage_aggregate_kernel, apply_relu=apply_relu),
        out_shape=jax.ShapeDtypeStruct((n_pad, f_out), out_dtype),
        grid=(n_pad // tm, k_steps),
        in_specs=[
            pl.BlockSpec((tm, f_out),
                         lambda i, k: (num_rel * rows_per_tile + i, 0)),  # S tile
            a_spec,                                                       # A_cat
            pl.BlockSpec((tk, f_out), lambda i, k: (k, 0)),               # Y_cat
        ],
        out_specs=pl.BlockSpec((tm, f_out), lambda i, k: (i, 0)),
        scratch_shapes=[pltpu.VMEM((tm, f_out), jnp.float32)],
        compiler_params=pltpu.CompilerParams(
            dimension_semantics=("parallel", "arbitrary")),
    )(y_all_flat, a_cat, y_all_flat)


def hetero_sage_layer(a_cat, x, w_stack, b_stack, *, apply_relu, out_dtype,
                      tm, tk):
    """One heterogeneous SAGE layer (all relations + self path fused)."""
    n_pad = x.shape[0]
    num_rel = w_stack.shape[0] - 1            # last slot is the folded self path
    f_out = w_stack.shape[-1]
    y_all = _feature_transform(x, w_stack, b_stack, tm=tm)   # (R+1, n_pad, f_out)
    y_all_flat = y_all.reshape(-1, f_out)                    # contiguous view
    return _sage_aggregate(a_cat, y_all_flat, num_rel=num_rel, n_pad=n_pad,
                           apply_relu=apply_relu, out_dtype=out_dtype,
                           tm=tm, tk=tk)
    # TODO(synk): for micro-graphs (<= a few row tiles), compute the Y tile on
    # the fly inside the aggregate kernel (Wn resident in VMEM) to drop the
    # separate launch and Y's HBM round trip entirely.


# ---------------------------------------------------------------------------
# Glue: graph preprocessing + deterministic parameter init (lane-padded).
# ---------------------------------------------------------------------------
def build_mean_adj(src, dst, num_nodes, n_pad):
    """Dense row-normalized (mean) adjacency, zero-padded to n_pad."""
    del num_nodes  # indices are already < num_nodes <= n_pad
    a = jnp.zeros((n_pad, n_pad), jnp.float32).at[dst, src].add(1.0)
    deg = a.sum(axis=1, keepdims=True)
    return a / jnp.maximum(deg, 1.0)  # zero-degree rows stay zero (PyG mean)
    # TODO(synk): for realistic sparse graphs, replace the dense O(N^2)
    # adjacency with a CSR row-offset kernel via PrefetchScalarGridSpec
    # (num_scalar_prefetch) gathering X/Y rows per destination node.


def _glorot(key, fan_in, fan_out, f_in_pad, f_out_pad):
    lim = (6.0 / (fan_in + fan_out)) ** 0.5
    w = jax.random.uniform(key, (fan_in, fan_out), jnp.float32, -lim, lim)
    return jnp.zeros((f_in_pad, f_out_pad), jnp.float32).at[:fan_in, :fan_out].set(w)


def init_params(key, num_layers, in_channels, hidden_channels, out_channels,
                set_out_input_dim_equal, num_relations):
    """Per layer, per relation: SAGEConv weights (lin_l has bias, lin_r none)."""
    layers = []
    f_in = in_channels
    for i in range(num_layers):
        if set_out_input_dim_equal and i == num_layers - 1:
            f_out = out_channels
        else:
            f_out = hidden_channels
        f_in_pad, f_out_pad = _round_up(f_in, LANE), _round_up(f_out, LANE)
        rels = []
        for _ in range(num_relations):
            key, k1, k2, k3 = jax.random.split(key, 4)
            blim = 1.0 / (f_in ** 0.5)
            bias = jnp.zeros((1, f_out_pad), jnp.float32).at[:, :f_out].set(
                jax.random.uniform(k3, (1, f_out), jnp.float32, -blim, blim))
            rels.append({
                "w_neigh": _glorot(k1, f_in, f_out, f_in_pad, f_out_pad),  # lin_l W^T
                "w_self": _glorot(k2, f_in, f_out, f_in_pad, f_out_pad),   # lin_r W^T
                "bias": bias,                                              # lin_l bias
            })
        layers.append({"rels": rels, "f_in": f_in, "f_out": f_out})
        f_in = f_out
    return layers


def hetero_graphsage_forward(x_src, a_cat, layer_params, dropout_p):
    """Full forward pass of HeterogeneousGraphSAGE for node type 'SRC'."""
    del dropout_p  # eval mode: F.dropout(training=False) is the identity.
    # TODO(synk): training-mode dropout could be added with pltpu.prng_random_bits.
    n = x_src.shape[0]
    n_pad = a_cat.shape[0]
    tm = _pick_row_tile(n_pad)
    tk = _pick_k_tile(a_cat.shape[1])

    f_in_pad = layer_params[0]["rels"][0]["w_neigh"].shape[0]
    x = (jnp.zeros((n_pad, f_in_pad), jnp.float32)
         .at[:n, :x_src.shape[1]].set(x_src)
         .astype(jnp.bfloat16))                 # bf16 MXU operands
    a_cat_bf = a_cat.astype(jnp.bfloat16)       # 1/deg values quantize safely
    # TODO(synk): on v7x, A_cat could be cast to fp8 (e4m3) to halve the
    # dominant HBM stream; needs a tolerance re-check of the mean weights.

    num_layers = len(layer_params)
    out = None
    for i, layer in enumerate(layer_params):
        rels = layer["rels"]
        f_out_pad = rels[0]["w_neigh"].shape[1]
        num_rel = len(rels)
        # Fold across relations once per layer (tiny, plain JAX): slots 0..R-1
        # hold Wn_r (zero bias), slot R holds sum_r Ws_r with the summed bias.
        ws_sum = sum(r["w_self"] for r in rels)
        b_sum = sum(r["bias"] for r in rels)
        w_stack = jnp.stack([r["w_neigh"] for r in rels] + [ws_sum]
                            ).astype(jnp.bfloat16)
        b_stack = jnp.concatenate(
            [jnp.zeros((num_rel, 1, f_out_pad), jnp.float32), b_sum[None]],
            axis=0)
        is_last = i == num_layers - 1
        out = hetero_sage_layer(
            a_cat_bf, x, w_stack, b_stack,
            apply_relu=not is_last,
            # Hidden activations leave the kernel already in bf16 (halves the
            # output HBM writes, removes the wrapper-side cast pass); only the
            # final layer is materialized in f32.
            out_dtype=jnp.float32 if is_last else jnp.bfloat16,
            tm=tm, tk=tk)
        x = out                                 # already bf16 for hidden layers
    # TODO(synk): fuse all layers into a single pallas_call (activations kept
    # in VMEM scratch) to remove per-layer launches + inter-layer HBM trips.
    return {"SRC": out[:n, :layer_params[-1]["f_out"]]}


# ---------------------------------------------------------------------------
# Pure-JAX reference with matching bf16 quantization (for a sanity check).
# ---------------------------------------------------------------------------
def reference_forward(x_src, a_cat, layer_params, n):
    n_pad = a_cat.shape[0]
    f_in_pad = layer_params[0]["rels"][0]["w_neigh"].shape[0]
    a = a_cat.astype(jnp.bfloat16).astype(jnp.float32)
    x = (jnp.zeros((n_pad, f_in_pad), jnp.float32)
         .at[:n, :x_src.shape[1]].set(x_src)
         .astype(jnp.bfloat16))
    num_layers = len(layer_params)
    out = None
    for i, layer in enumerate(layer_params):
        rels = layer["rels"]
        xf = x.astype(jnp.float32)
        ws = sum(r["w_self"] for r in rels).astype(jnp.bfloat16).astype(jnp.float32)
        b = sum(r["bias"] for r in rels)
        y_cat = jnp.concatenate(
            [(xf @ r["w_neigh"].astype(jnp.bfloat16).astype(jnp.float32)
              ).astype(jnp.bfloat16).astype(jnp.float32) for r in rels],
            axis=0)
        s = (xf @ ws + b).astype(jnp.bfloat16).astype(jnp.float32)
        out = a @ y_cat + s
        if i != num_layers - 1:
            out = jnp.maximum(out, 0.0)
            x = out.astype(jnp.bfloat16)
    return out[:n, :layer_params[-1]["f_out"]]


# ---------------------------------------------------------------------------
# Demo
# ---------------------------------------------------------------------------
if __name__ == "__main__":
    key = jax.random.PRNGKey(0)

    num_nodes = 200          # padded to 256 rows (two 128-row tiles)
    in_channels = 96         # padded to 128 lanes
    hidden_channels = 96     # padded to 128 lanes
    out_channels = 64        # padded to 128 lanes
    num_layers = 2
    dropout_p = 0.3
    num_edges = 1000
    num_relations = 2

    n_pad = _round_up(num_nodes, NODE_PAD)

    key, kx, ke0s, ke0d, ke1s, ke1d, kp = jax.random.split(key, 7)

    # x_dict = {'SRC': [N, F_in]}
    x_src = jax.random.normal(kx, (num_nodes, in_channels), jnp.float32)

    # edge_index_dict with two relation types over node type 'SRC'
    src0 = jax.random.randint(ke0s, (num_edges,), 0, num_nodes)
    dst0 = jax.random.randint(ke0d, (num_edges,), 0, num_nodes)
    src1 = jax.random.randint(ke1s, (num_edges,), 0, num_nodes)
    dst1 = jax.random.randint(ke1d, (num_edges,), 0, num_nodes)

    # A_cat = [A0 | A1]: relations concatenated along K so the cross-relation
    # sum is a single long-K MXU accumulation.
    a_cat = jnp.concatenate(
        [build_mean_adj(src0, dst0, num_nodes, n_pad),
         build_mean_adj(src1, dst1, num_nodes, n_pad)], axis=1)

    params = init_params(kp, num_layers, in_channels, hidden_channels,
                         out_channels, set_out_input_dim_equal=True,
                         num_relations=num_relations)

    out = hetero_graphsage_forward(x_src, a_cat, params, dropout_p)["SRC"]
    out = jax.block_until_ready(out)
    assert out.shape == (num_nodes, out_channels)
    assert bool(jnp.all(jnp.isfinite(out)))

    ref = reference_forward(x_src, a_cat, params, num_nodes)
    err = float(jnp.max(jnp.abs(out - ref)))
    assert err < 5e-2, f"mismatch vs reference: max|diff|={err}"

    print("KERNEL_OK")
</pallas_src>

<mosaic_0001>
module attributes {stable_mosaic.version = 11 : i64} {
  func.func @_feature_transform_kernel(%arg0: i32, %arg1: i32, %arg2: memref<128x128xbf16, #tpu.memory_space<vmem>>, %arg3: memref<1x128x128xbf16, #tpu.memory_space<vmem>>, %arg4: memref<1x1x128xf32, #tpu.memory_space<vmem>>, %arg5: memref<1x128x128xbf16, #tpu.memory_space<vmem>>) attributes {dimension_semantics = [#tpu.dimension_semantics<parallel>, #tpu.dimension_semantics<parallel>], iteration_bounds = array<i64: 3, 2>, scalar_prefetch = 0 : i64, scratch_operands = 0 : i64, tpu.core_type = #tpu.core_type<tc>, window_params = [{transform_indices = @transform_0, window_bounds = array<i64: 128, 128>}, {transform_indices = @transform_1, window_bounds = array<i64: 1, 128, 128>}, {transform_indices = @transform_2, window_bounds = array<i64: 1, 1, 128>}, {transform_indices = @transform_3, window_bounds = array<i64: 1, 128, 128>}]} {
    %c0 = arith.constant 0 : index
    %c0_0 = arith.constant 0 : index
    %0 = vector.load %arg2[%c0, %c0_0] : memref<128x128xbf16, #tpu.memory_space<vmem>>, vector<128x128xbf16>
    %c0_1 = arith.constant 0 : index
    %c0_2 = arith.constant 0 : index
    %c0_3 = arith.constant 0 : index
    %1 = vector.load %arg3[%c0_1, %c0_2, %c0_3] : memref<1x128x128xbf16, #tpu.memory_space<vmem>>, vector<1x128x128xbf16>
    %2 = vector.shape_cast %1 : vector<1x128x128xbf16> to vector<128x128xbf16>
    %cst = arith.constant dense<0.000000e+00> : vector<128x128xf32>
    %3 = tpu.matmul %0, %2, %cst {dimension_numbers = #tpu.dot_dimension_numbers<[1], [0], [0], [1], [0, 0, 1, 1], [], []>} : vector<128x128xbf16>, vector<128x128xbf16>, vector<128x128xf32> -> vector<128x128xf32>
    %c0_4 = arith.constant 0 : index
    %c0_5 = arith.constant 0 : index
    %c0_6 = arith.constant 0 : index
    %4 = vector.load %arg4[%c0_4, %c0_5, %c0_6] : memref<1x1x128xf32, #tpu.memory_space<vmem>>, vector<1x1x128xf32>
    %5 = vector.shape_cast %4 : vector<1x1x128xf32> to vector<1x128xf32>
    %6 = vector.broadcast %5 : vector<1x128xf32> to vector<128x128xf32>
    %7 = arith.addf %3, %6 : vector<128x128xf32>
    %8 = arith.truncf %7 : vector<128x128xf32> to vector<128x128xbf16>
    %c0_7 = arith.constant 0 : index
    %c0_8 = arith.constant 0 : index
    %c0_9 = arith.constant 0 : index
    %9 = vector.load %arg5[%c0_7, %c0_8, %c0_9] : memref<1x128x128xbf16, #tpu.memory_space<vmem>>, vector<1x128x128xbf16>
    %10 = vector.shape_cast %9 : vector<1x128x128xbf16> to vector<128x128xbf16>
    %11 = vector.shape_cast %8 : vector<128x128xbf16> to vector<1x128x128xbf16>
    tpu.vector_store %arg5[%c0_7, %c0_8, %c0_9], %11 {strides = array<i32>} : memref<1x128x128xbf16, #tpu.memory_space<vmem>>, vector<1x128x128xbf16>,
    return
  }
  func.func @transform_0(%arg0: i32, %arg1: i32) -> (i32, i32) {
    %c0_i32 = arith.constant 0 : i32
    %c0_i32_0 = arith.constant 0 : i32
    return %arg1, %c0_i32 : i32, i32
  }
  func.func @transform_1(%arg0: i32, %arg1: i32) -> (i32, i32, i32) {
    %c0_i32 = arith.constant 0 : i32
    %c0_i32_0 = arith.constant 0 : i32
    %c0_i32_1 = arith.constant 0 : i32
    return %arg0, %c0_i32, %c0_i32_0 : i32, i32, i32
  }
  func.func @transform_2(%arg0: i32, %arg1: i32) -> (i32, i32, i32) {
    %c0_i32 = arith.constant 0 : i32
    %c0_i32_0 = arith.constant 0 : i32
    %c0_i32_1 = arith.constant 0 : i32
    return %arg0, %c0_i32, %c0_i32_0 : i32, i32, i32
  }
  func.func @transform_3(%arg0: i32, %arg1: i32) -> (i32, i32, i32) {
    %c0_i32 = arith.constant 0 : i32
    %c0_i32_0 = arith.constant 0 : i32
    return %arg0, %arg1, %c0_i32 : i32, i32, i32
  }
}

</mosaic_0001>

<bundles_post_ra>
// kernel: tpu_custom_call.1
= control target key start
LH: loop header
LB: loop body
LE: loop exit
PB: predicated region body
PF: predicated region fallthrough
CT: control target
= control target key end

     0   :  { %s1534_s0 = inlined_call_operand.hbm [shape: bf16[256,128], index: 0, kind: input, shape index: {}]   ;;  %s1535_s1 = inlined_call_operand.hbm [shape: bf16[3,128,128], index: 1, kind: input, shape index: {}]   ;;  %s1536_s2 = inlined_call_operand.hbm [shape: f32[3,1,128], index: 2, kind: input, shape index: {}]   ;;  %s1537_s3 = inlined_call_operand.hbm [shape: bf16[3,256,128], index: 3, kind: output, shape index: {}]  }
   0x1   :  { %1552 = sst [smem:[#allocation25_spill]] %s1535_s1 }
   0x2   :  { %1553 = sst [smem:[#allocation26_spill]] %s1537_s3 }
   0x3   :  { %8 = vsyncpa [#allocation3], 0 }
   0x4   :  { %10 = vsyncpa [#allocation3 + $0x1], 0 }
   0x5   :  { %11 = vsyncpa [#allocation6], 0 }
   0x6   :  { %13 = vsyncpa [#allocation6 + $0x1], 0 }
   0x7   :  { %14 = vsyncpa [#allocation4], 0 }
   0x8   :  { %16 = vsyncpa [#allocation4 + $0x1], 0  ;;  %s1218_s12 = smov 0   ;;  %s1220_s13 = smov 0  }
   0x9   :  { %s1222_s14 = smov 0   ;;  %s1224_s15 = smov 0  }
   0xa   :  { %s1226_s16 = smov 0   ;;  %s1228_s17 = smov 0  }
   0xb   :  { %s1230_s18 = smov 0   ;;  %s1232_s19 = smov 0  }
   0xc   :  { %s1234_s20 = smov 0   ;;  %s1236_s21 = smov 0  }
   0xd   :  { %s1238_s22 = smov 0   ;;  %s1240_s23 = smov 0  }
   0xe   :  { %s1242_s24 = smov 0   ;;  %s1244_s25 = smov 0  }
   0xf LB: > { %1554 = sst [smem:[#allocation12_spill]] %s1140_s12  ;;  %s1287_s26 = sadd.s32 4294967295, %s1192_s25   ;;  %s1192_s25 = sphi %s1244_s25, %s22_s25   ;;  %s1188_s24 = sphi %s1242_s24, %s1604_s24   ;;  %s1184_s23 = sphi %s1240_s23, %s1594_s23   ;;  %s1180_s22 = sphi %s1238_s22, %s1603_s22   ;;  %s1176_s21 = sphi %s1236_s21, %s1593_s21   ;;  %s1172_s20 = sphi %s1234_s20, %s1592_s20   ;;  %s1168_s19 = sphi %s1232_s19, %s1602_s19   ;;  %s1164_s18 = sphi %s1230_s18, %s1601_s18   ;;  %s1160_s17 = sphi %s1228_s17, %s1600_s17   ;;  %s1156_s16 = sphi %s1226_s16, %s1599_s16   ;;  %s1152_s15 = sphi %s1224_s15, %s1598_s15   ;;  %s1148_s14 = sphi %s1222_s14, %s1589_s14   ;;  %s1144_s13 = sphi %s1220_s13, %s1597_s13   ;;  %s1140_s12 = sphi %s1218_s12, %s1596_s12  }
  0x10   : > { %1555 = sst [smem:[#allocation13_spill]] %s1148_s14  ;;  %p49_p0 = scmp.eq.s32.totalorder %s1192_s25, 0 }
  0x11   : > { %1556 = sst [smem:[#allocation14_spill]] %s1172_s20  ;;  %p55_p1 = scmp.eq.s32.totalorder %s1287_s26, 0 }
  0x12   : > { %1557 = sst [smem:[#allocation15_spill]] %s1176_s21  ;;  %p74_p2 = scmp.ne.s32.totalorder %s1160_s17, %s1156_s16 }
  0x13   : > { %1558 = sst [smem:[#allocation16_spill]] %s1180_s22  ;;  %p80_p3 = scmp.ne.s32.totalorder %s1156_s16, %s1152_s15 }
  0x14   : > { %1559 = sst [smem:[#allocation17_spill]] %s1184_s23  ;;  %p132_p4 = scmp.eq.s32.totalorder %s1287_s26, 5 }
  0x15   : > { %p1298_p5 = por %p74_p2, %p49_p0  ;;  %p1304_p6 = por %p80_p3, %p55_p1 }
  0x16   : > { %p1541_p7 = scmp.lt.s32.totalorder %s1192_s25, 6  ;;  %s180_s30 = sand.u32 1, %s1192_s25  }
  0x17   : > { %s1538_s4 = sand.u32 1, %s1160_s17   ;;  %s723_s6 = sshll.u32 %s1188_s24, 6 }
  0x18   : > { %s645_s5 = sshll.u32 %s1538_s4, 6  ;;  %s1562_s1 = sld [smem:[#allocation25_spill]] }
  0x19   : > { %s184_s11 = scalar_lea.vmem [#allocation5], %s645_s5  ;;  %p1321_p8 = pnand %p1541_p7, %p1298_p5 }
  0x1a   : > { %s192_s15 = sshll.u32 %s184_s11, 4  ;;  %p648_p9 = scmp.ge.s32.totalorder %s1192_s25, 1  ;;  %s193_s15 = int_to_ptr.vmem [resolvable:$true] %s192_s15 }
  0x1b   : > { %p217_p10 = scmp.lt.s32.totalorder %s1192_s25, 7  ;;  %s1327_s5 = scalar_lea.sflag [#allocation6], %s180_s30 }
  0x1c   : > { %s1540_s7 = smov 4   ;;  %s639_s8 = sadd.s32 4294967294, %s1192_s25  }
  0x1d   : > { %p1335_p11 = pnand %p648_p9, %p217_p10  ;;  %s34_s30 = sadd.s32 1, %s1188_s24 }
  0x1e   : > { %s189_s9 = scalar_lea.hbm %s1562_s1, %s723_s6  ;;  %s1539_s6 = smov 64  }
  0x1f   : > { %s190_s10 = sshll.u32 %s189_s9, 4  ;;  %s31_s9 = sadd.s32 1, %s1184_s23  ;;  %s191_s10 = int_to_ptr.hbm [resolvable:$true] %s190_s10 }
  0x20   : > { %825 = dma.hbm_to_vmem [thread:$0]  (!%p1321_p8), %s191_s10, 1024, %s193_s15, %s1327_s5, %s1539_s6, %s1539_s6, %s1540_s7  }
  0x21   : > { %p32_p12 = scmp.ge.s32.totalorder %s31_s9, 2  ;;  %s41_s11 = sadd.s32 1, %s1172_s20 }
  0x22   : > { %p48_p13 = scmp.ne.s32.totalorder %s1172_s20, %s1168_s19  ;;  %p54_p2 = scmp.ne.s32.totalorder %s1168_s19, %s1164_s18 }
  0x23   : > { %s1606_s9 = smov (%p32_p12, %s31_s9), 0  ;;  %s1608_s30 = smov (!%p32_p12, %s34_s30), %s1188_s24 }
  0x24   : > { %1565 = sst [smem:[#allocation18_spill]] %s1606_s9  ;;  %s38_s10 = ssub.s32 %s1184_s23, %s1606_s9 }
  0x25   : > { %p1354_p3 = por %p49_p0, %p48_p13  ;;  %p36_p5 = scmp.ge.s32.totalorder %s1608_s30, 3 }
  0x26   : > { %p39_p9 = scmp.eq.s32.totalorder %s38_s10, 0  ;;  %p1360_p10 = por %p55_p1, %p54_p2 }
  0x27   : > { %s121_s6 = sadd.s32 1, %s1148_s14  ;;  %s1610_s30 = smov (%p36_p5, %s1608_s30), 0 }
  0x28   : > { %1568 = sst [smem:[#allocation19_spill]] %s1610_s30  ;;  %s64_s27 = ssub.s32 %s1188_s24, %s1610_s30 }
  0x29   : > { %s1368_s7 = scalar_select %p39_p9, %s1172_s20, %s41_s11  }
  0x2a   : > { %p131_p0 = scmp.ne.s32.totalorder %s1148_s14, %s1144_s13  ;;  %p65_p12 = scmp.eq.s32.totalorder %s64_s27, 0 }
  0x2b   : > { %1569 = sst [smem:[#allocation20_spill]] %s1368_s7  ;;  %s118_s1 = sor.u32 %s64_s27, %s38_s10 }
  0x2c   : > { %p119_p13 = scmp.eq.s32.totalorder %s118_s1, 0  ;;  %p1376_p7 = por %p132_p4, %p131_p0 }
  0x2d   : > { %s1572_s3 = sadd.s32 1, %s1160_s17  ;;  %p137_p1 = scmp.ne.s32.totalorder %s1144_s13, %s1140_s12 }
  0x2e   : > { %s1570_s9 = scalar_select %p1376_p7, 1, 0 }
  0x2f   : > { %s1383_s22 = scalar_select %p65_p12, %s1160_s17, %s1572_s3  }
  0x30   : > { %1571 = sst [smem:[#allocation21_spill]] %s1570_s9  ;;  %p138_p2 = scmp.eq.s32.totalorder %s639_s8, 5 }
  0x31   : > { %1573 = sst [smem:[#allocation22_spill]] %s1383_s22  ;;  %s158_s11 = sand.u32 1, %s1172_s20  }
  0x32   : > { %s1386_s21 = scalar_select %p119_p13, %s1148_s14, %s121_s6  }
  0x33   : > { %s722_s30 = sshll.u32 %s1184_s23, 6  ;;  %p1392_p5 = por %p138_p2, %p137_p1 }
  0x34   : > { %1574 = sst [smem:[#allocation23_spill]] %s1386_s21  ;;  %s642_s27 = sshll.u32 %s158_s11, 6 }
  0x35   : > { %s1575_s1 = scalar_select %p1392_p5, 1, 0 }
  0x36   : > { %s167_s9 = scalar_lea.hbm %s1534_s0, %s722_s30  ;;  %s162_s6 = scalar_lea.vmem [#allocation2], %s642_s27 }
  0x37   : > { %1576 = sst [smem:[#allocation24_spill]] %s1575_s1  ;;  %s168_s3 = sshll.u32 %s167_s9, 4  ;;  %s169_s3 = int_to_ptr.hbm [resolvable:$true] %s168_s3 }
  0x38   : > { %s170_s22 = sshll.u32 %s162_s6, 4  ;;  %p1577_p4 = scmp.lt.s32.totalorder %s1192_s25, 6  ;;  %s171_s22 = int_to_ptr.vmem [resolvable:$true] %s170_s22 }
  0x39   : > { %s208_s20 = scalar_lea.hbm %s1536_s2, %s1188_s24  ;;  %s159_s14 = scalar_lea.sflag [#allocation3], %s158_s11 }
  0x3a   : > { %p820_p9 = pnand %p1577_p4, %p1354_p3  ;;  %s210_s21 = sshll.u32 %s208_s20, 4  ;;  %s211_s21 = int_to_ptr.hbm [resolvable:$true] %s210_s21 }
  0x3b   : > { %s1578_s1 = smov 4   ;;  %s1579_s12 = smov 64  }
  0x3c   : > { %822 = dma.hbm_to_vmem [thread:$0]  (!%p820_p9), %s169_s3, 1024, %s171_s22, %s159_s14, %s1579_s12, %s1579_s12, %s1578_s1  }
  0x3d   : > { %s1580_s7 = sand.u32 1, %s1160_s17   ;;  %221 = sbr.rel (%p1335_p11) target bundleno = 269 (0x10d), region = 32 }
  0x3e   : > { %s205_s9 = scalar_lea.vmem [#allocation7], %s1580_s7  ;;  %s223_s23 = sand.u32 (!%p1335_p11), 1, %s1168_s19  }
  0x3f   : > { %s212_s30 = sshll.u32 %s205_s9, 4  ;;  %s649_s15 = sshll.u32 (!%p1335_p11), %s223_s23, 6  ;;  %s213_s30 = int_to_ptr.vmem [resolvable:$true] %s212_s30 }
  0x40   : > { %828 = dma.hbm_to_vmem [thread:$0]  (!%p1321_p8), %s211_s21, 16, %s213_s30, %s1327_s5  }
  0x41   : > { %s224_s20 = scalar_lea.sflag (!%p1335_p11), [#allocation3], %s223_s23  ;;  %s1418_s11 = scalar_lea.vmem (!%p1335_p11), [#allocation2], %s649_s15 }
  0x42   : > { %1127 = dma.done.wait (%p1360_p10), %s224_s20, 1024  }
  0x43   : > { %1129 = vsyncadd (%p1360_p10), %s224_s20, 4294966272  ;;  %s233_s12 = sand.u32 1, %s1287_s26   ;;  %s235_s14 = sand.u32 1, %s1156_s16  }
  0x44   : > { %s650_s21 = sshll.u32 %s235_s14, 6  ;;  %s234_s22 = scalar_lea.sflag [#allocation6], %s233_s12 }
  0x45   : > { %s1426_s4 = scalar_lea.vmem [#allocation5], %s650_s21 }
  0x46   : > { %1131 = dma.done.wait (%p1304_p6), %s234_s22, 1040  }
  0x47   : > { %1133 = vsyncadd (%p1304_p6), %s234_s22, 4294966256  ;;  %v739_v0 = vld [vmem:[%s1426_s4 + $0x38] sm:$0xff]  ;;  %v738_v1 = vld [vmem:[%s1426_s4 + $0x30] sm:$0xff]  ;;  %s1434_s26 = scalar_lea.vmem [#allocation7], %s235_s14  ;;  %s276_s29 = sand.u32 1, %s1144_s13  }
  0x48   : > { %413 = vmatpush.bf16.msra.mxu0 %v739_v0  ;;  %787 = vmatpush.bf16.msra.mxu1 %v739_v0  ;;  %v737_v2 = vld [vmem:[%s1426_s4 + $0x28] sm:$0xff]  ;;  %v736_v3 = vld [vmem:[%s1426_s4 + $0x20] sm:$0xff]  ;;  %v735_v4 = vld [vmem:[%s1426_s4 + $0x18] sm:$0xff]  ;;  %s651_s5 = sshll.u32 %s276_s29, 6  ;;  %s1581_s28 = sld [smem:[#allocation15_spill]] }
  0x49   : > { %788 = vmatpush.bf16.msra.mxu2 %v739_v0  ;;  %789 = vmatpush.bf16.msra.mxu3 %v739_v0  ;;  %v734_v5 = vld [vmem:[%s1426_s4 + $0x10] sm:$0xff]  ;;  %v733_v6 = vld [vmem:[%s1426_s4 + $0x8] sm:$0xff]  ;;  %v732_v7 = vld [vmem:[%s1426_s4] sm:$0xff]  ;;  %s1582_s18 = sld [smem:[#allocation16_spill]]  ;;  %s1454_s1 = scalar_lea.vmem [#allocation8], %s651_s5 }
  0x4a   : > { %v724_v8 = vld [vmem:[%s1418_s11] sm:$0xff]  ;;  %v726_v9 = vld [vmem:[%s1418_s11 + $0x10] sm:$0xff]  ;;  %v725_v12 = vld [vmem:[%s1418_s11 + $0x8] sm:$0xff]  ;;  %s1583_s9 = sld [smem:[#allocation26_spill]]  ;;  %s509_s23 = sshll.u32 %s1454_s1, 4  ;;  %s510_s23 = int_to_ptr.vmem [resolvable:$true] %s509_s23 }
  0x4b   : > { %v728_v10 = vld [vmem:[%s1418_s11 + $0x20] sm:$0xff]  ;;  %v730_v11 = vld [vmem:[%s1418_s11 + $0x30] sm:$0xff]  ;;  %v727_v13 = vld [vmem:[%s1418_s11 + $0x18] sm:$0xff] }
  0x4c   : > { %414 = vmatpush.bf16.msra.mxu0 %v738_v1  ;;  %790 = vmatpush.bf16.msra.mxu1 %v738_v1  ;;  %v729_v14 = vld [vmem:[%s1418_s11 + $0x28] sm:$0xff]  ;;  %v731_v15 = vld [vmem:[%s1418_s11 + $0x38] sm:$0xff]  ;;  %v951_v18 = vld [vmem:[%s1434_s26] ss:$0 sm:$0xff]  ;;  %s495_s11 = scalar_lea.sflag [#allocation4], %s276_s29 }
  0x4d   : > { %791 = vmatpush.bf16.msra.mxu2 %v738_v1  ;;  %792 = vmatpush.bf16.msra.mxu3 %v738_v1 }
  0x4e   : > { %s717_s27 = sshll.u32 %s1581_s28, 4 }
  0x4f   : > { %s718_s10 = sshll.u32 %s1582_s18, 5 }
  0x50   : > { %415 = vmatpush.bf16.msra.mxu0 %v737_v2  ;;  %793 = vmatpush.bf16.msra.mxu1 %v737_v2  ;;  %s506_s3 = sadd.s32 %s718_s10, %s717_s27  ;;  %s1062_s4 = scalar_lea.hbm %s1583_s9, 384 }
  0x51   : > { %794 = vmatpush.bf16.msra.mxu2 %v737_v2  ;;  %795 = vmatpush.bf16.msra.mxu3 %v737_v2  ;;  %s719_s6 = sshll.u32 %s506_s3, 2 }
  0x52   : > { %s508_s30 = scalar_lea.hbm %s1583_s9, %s719_s6 }
  0x53   : > { %s511_s15 = sshll.u32 %s508_s30, 4  ;;  %s512_s15 = int_to_ptr.hbm [resolvable:$true] %s511_s15 }
  0x54   : > { %416 = vmatpush.bf16.msra.mxu0 %v736_v3  ;;  %796 = vmatpush.bf16.msra.mxu1 %v736_v3  ;;  %s1056_s12 = sshra.s32 %s512_s15, 4  ;;  %s1057_s12 = int_to_ptr.hbm [resolvable:$true] %s1056_s12 }
  0x55   : > { %797 = vmatpush.bf16.msra.mxu2 %v736_v3  ;;  %798 = vmatpush.bf16.msra.mxu3 %v736_v3  ;;  %s1058_s14 = scalar_lea.hbm %s1057_s12, 64  ;;  %p1063_p3 = scmp.lt.s32.totalorder %s1057_s12, %s1583_s9 }
  0x56   : > { %p1059_p6 = scmp.ne.s32.totalorder %s1057_s12, %s1058_s14  ;;  %p1064_p10 = scmp.lt.s32.totalorder %s1062_s4, %s1058_s14 }
  0x58   : > { %417 = vmatpush.bf16.msra.mxu0 %v735_v4  ;;  %799 = vmatpush.bf16.msra.mxu1 %v735_v4  ;;  %p1060_p8 = pnand %p1059_p6, %p1376_p7  ;;  %p1065_p0 = por %p1064_p10, %p1063_p3 }
  0x59   : > { %800 = vmatpush.bf16.msra.mxu2 %v735_v4  ;;  %801 = vmatpush.bf16.msra.mxu3 %v735_v4 }
  0x5a   : > { %p1061_p11 = pneg %p1060_p8 }
  0x5c   : > { %418 = vmatpush.bf16.msra.mxu0 %v734_v5  ;;  %802 = vmatpush.bf16.msra.mxu1 %v734_v5  ;;  %p1066_p12 = pnand %p1065_p0, %p1061_p11 }
  0x5d   : > { %803 = vmatpush.bf16.msra.mxu2 %v734_v5  ;;  %804 = vmatpush.bf16.msra.mxu3 %v734_v5 }
  0x60   : > { %419 = vmatpush.bf16.msra.mxu0 %v733_v6  ;;  %805 = vmatpush.bf16.msra.mxu1 %v733_v6 }
  0x61   : > { %806 = vmatpush.bf16.msra.mxu2 %v733_v6  ;;  %807 = vmatpush.bf16.msra.mxu3 %v733_v6 }
  0x64   : > { %420 = vmatpush.bf16.msra.mxu0 %v732_v7  ;;  %808 = vmatpush.bf16.msra.mxu1 %v732_v7 }
  0x65   : > { %809 = vmatpush.bf16.msra.mxu2 %v732_v7  ;;  %810 = vmatpush.bf16.msra.mxu3 %v732_v7 }
  0x67   : > { %421 = vmatmul.bf16.vlgmr.msra.gmra.mxu0 %v724_v8  ;;  %431 = vmatmul.bf16.vlgmr.msra.gmra.mxu1 %v726_v9 }
  0x68   : > { %441 = vmatmul.bf16.vlgmr.msra.gmra.mxu2 %v728_v10  ;;  %451 = vmatmul.bf16.vlgmr.msra.gmra.mxu3 %v730_v11 }
  0x77   : > { %426 = vmatmul.bf16.gmra.mxu0 %v725_v12  ;;  %436 = vmatmul.bf16.gmra.mxu1 %v727_v13 }
  0x78   : > { %446 = vmatmul.bf16.gmra.mxu2 %v729_v14  ;;  %456 = vmatmul.bf16.gmra.mxu3 %v731_v15 }
  0xe4   : > { %v422_v16 = vpop.f32.mrf.mxu0  ;;  %v432_v17 = vpop.f32.mrf.mxu1 }
  0xe5   : > { %v423_v23 = vadd.f32 %v951_v18, %v422_v16  ;;  %v433_v24 = vadd.f32 %v951_v18, %v432_v17 }
  0xeb   : > { %v442_v19 = vpop.f32.mrf.mxu2  ;;  %v452_v20 = vpop.f32.mrf.mxu3 }
  0xec   : > { %v424_v21 = vpop.f32.mrf.mxu0  ;;  %v434_v22 = vpop.f32.mrf.mxu1  ;;  %v443_v31 = vadd.f32 %v951_v18, %v442_v19  ;;  %v453_v32 = vadd.f32 %v951_v18, %v452_v20 }
  0xed   : > { %v425_v25 = vadd.f32 %v951_v18, %v424_v21  ;;  %v435_v26 = vadd.f32 %v951_v18, %v434_v22 }
  0xef   : > { %v743_v27 = vpack.c.bf16 %v425_v25, %v423_v23  ;;  %v753_v28 = vpack.c.bf16 %v435_v26, %v433_v24 }
  0xf1   : > { %744 = vst [vmem:[%s1454_s1] sm:$0xff] %v743_v27  }
  0xf2   : > { %781 = vst [vmem:[%s1454_s1 + $0x10] sm:$0xff] %v753_v28  }
  0xf3   : > { %v444_v29 = vpop.f32.mrf.mxu2  ;;  %v454_v30 = vpop.f32.mrf.mxu3 }
  0xf4   : > { %v445_v33 = vadd.f32 %v951_v18, %v444_v29  ;;  %v455_v34 = vadd.f32 %v951_v18, %v454_v30  ;;  %v427_v35 = vpop.f32.mrf.mxu0  ;;  %v437_v36 = vpop.f32.mrf.mxu1 }
  0xf5   : > { %v428_v43 = vadd.f32 %v951_v18, %v427_v35  ;;  %v438_v44 = vadd.f32 %v951_v18, %v437_v36 }
  0xf6   : > { %v763_v37 = vpack.c.bf16 %v445_v33, %v443_v31  ;;  %v773_v38 = vpack.c.bf16 %v455_v34, %v453_v32 }
  0xf8   : > { %783 = vst [vmem:[%s1454_s1 + $0x20] sm:$0xff] %v763_v37  }
  0xf9   : > { %785 = vst [vmem:[%s1454_s1 + $0x30] sm:$0xff] %v773_v38  }
  0xfb   : > { %v447_v39 = vpop.f32.mrf.mxu2  ;;  %v457_v40 = vpop.f32.mrf.mxu3 }
  0xfc   : > { %v429_v41 = vpop.f32.mrf.mxu0  ;;  %v439_v42 = vpop.f32.mrf.mxu1  ;;  %v448_v51 = vadd.f32 %v951_v18, %v447_v39  ;;  %v458_v52 = vadd.f32 %v951_v18, %v457_v40 }
  0xfd   : > { %v430_v45 = vadd.f32 %v951_v18, %v429_v41  ;;  %v440_v46 = vadd.f32 %v951_v18, %v439_v42 }
  0xff   : > { %v748_v47 = vpack.c.bf16 %v430_v45, %v428_v43  ;;  %v758_v48 = vpack.c.bf16 %v440_v46, %v438_v44 }
 0x101   : > { %780 = vst [vmem:[%s1454_s1 + $0x8] sm:$0xff] %v748_v47  }
 0x102   : > { %782 = vst [vmem:[%s1454_s1 + $0x18] sm:$0xff] %v758_v48  }
 0x103   : > { %v449_v49 = vpop.f32.mrf.mxu2  ;;  %v459_v50 = vpop.f32.mrf.mxu3 }
 0x104   : > { %v450_v53 = vadd.f32 %v951_v18, %v449_v49  ;;  %v460_v54 = vadd.f32 %v951_v18, %v459_v50 }
 0x106   : > { %v768_v55 = vpack.c.bf16 %v450_v53, %v448_v51  ;;  %v778_v56 = vpack.c.bf16 %v460_v54, %v458_v52 }
 0x108   : > { %784 = vst [vmem:[%s1454_s1 + $0x28] sm:$0xff] %v768_v55  }
 0x109   : > { %786 = vst [vmem:[%s1454_s1 + $0x38] sm:$0xff] %v778_v56  }
 0x10a   : > { %1069 = shalt.err (!%p1066_p12)
}
 0x10b   : > { %s1196_s29 = smov 64   ;;  %s1197_s28 = smov 4  }
 0x10c   : > { %817 = dma.vmem_to_hbm [thread:$0]  (%p1376_p7), %s510_s23, 1024, %s512_s15, %s495_s11, %s1196_s29, %s1196_s29, %s1197_s28  }
 0x10d PF: > { %s1585_s18 = sld [smem:[#allocation12_spill]]  ;;  %p834_p13 = scmp.ge.s32.totalorder %s1192_s25, 2 }
 0x10f   : > { %p830_p1 = pnand %p834_p13, %p1392_p5 }
 0x111   : > { %p831_p2 = pneg %p830_p1 }
 0x113   : > { %s526_s27 = sand.u32 1, %s1585_s18  }
 0x114   : > { %s527_s10 = scalar_lea.sflag [#allocation4], %s526_s27 }
 0x115   : > { %1135 = dma.done.wait (%p831_p2), %s527_s10, 1024  }
 0x116   : > { %1137 = vsyncadd (%p831_p2), %s527_s10, 4294966272  ;;  %s22_s25 = sadd.s32 1, %s1192_s25   ;;  %s1588_s6 = sld [smem:[#allocation13_spill]] }
 0x117   : > { %p1487_p4 = scmp.ge.s32.totalorder %s22_s25, 8   ;;  %s1589_s14 = sld [smem:[#allocation23_spill]] }
 0x118   : > { %s1590_s8 = sld [smem:[#allocation22_spill]]  ;;  %s1596_s12 = smov %s1144_s13 }
 0x119   : > { %s1591_s7 = sld [smem:[#allocation14_spill]]  ;;  %s1598_s15 = smov %s1156_s16 }
 0x11a   : > { %s1592_s20 = sld [smem:[#allocation20_spill]]  ;;  %s1599_s16 = smov %s1160_s17 }
 0x11b   : > { %s1593_s21 = sld [smem:[#allocation17_spill]]  ;;  %s1601_s18 = smov %s1168_s19 }
 0x11c   : > { %s1594_s23 = sld [smem:[#allocation18_spill]]  ;;  %s1597_s13 = smov %s1588_s6 }
 0x11d   : > { %s1595_s30 = sld [smem:[#allocation19_spill]]  ;;  %s1603_s22 = smov %s1188_s24 }
 0x11e   : > { %s1600_s17 = smov %s1590_s8 }
 0x11f   : > { %s1602_s19 = smov %s1591_s7  ;;  %21 = sbr.rel (!%p1487_p4) target bundleno = 15 (0xf), region = 101 }
 0x123   : > { %s1604_s24 = smov %s1595_s30 }
 0x124   :  { %533 = vsyncpa [#allocation3], 1 }
 0x125   :  { %535 = vsyncpa [#allocation3 + $0x1], 1 }
 0x126   :  { %536 = vsyncpa [#allocation6], 1 }
 0x127   :  { %538 = vsyncpa [#allocation6 + $0x1], 1 }
 0x128   :  { %539 = vsyncpa [#allocation4], 1 }
 0x129   :  { %541 = vsyncpa [#allocation4 + $0x1], 1 }

</bundles_post_ra>
